<compile_context>
chip_gen: v7x
topology: tpu7x:2x2x1
jax: 0.10.0
libtpu: 0.0.40
codegen_flags: <defaults>
</compile_context>

<pallas_src>
import itertools
import numpy as np
import jax
import jax.numpy as jnp
from jax import lax
from jax.experimental import pallas as pl
from jax.experimental.pallas import tpu as pltpu

# Matcher weights (HungarianMatcher.__init__ defaults) -- no learned params.
COST_IS_REFERRED = 1.0
COST_DICE = 1.0
COST_CONDITIONED_IOU = 1.0
SMOOTH = 1.0


def _pick_block_n(n_padded, max_block=256):
    """Largest row-block (multiple of 8) dividing n_padded, capped at max_block."""
    if n_padded <= max_block:
        return n_padded
    for cand in range(max_block - (max_block % 8), 7, -8):
        if n_padded % cand == 0:
            return cand
    return n_padded


def _vmem_limit_bytes(tn, mp, hw):
    """Rough double-buffered VMEM budget; only raise the scoped limit if needed."""
    in_bytes = 2 * (2 * tn * hw + mp * hw) * 2          # bf16 inputs, 2 buffers
    out_bytes = 2 * tn * mp * 4 + tn * 128 * 4          # f32 out + iou scratch
    est = in_bytes + out_bytes
    if est <= 24 * 1024 * 1024:
        return None                                      # default scoped limit is fine
    return min(int(est * 2), 100 * 1024 * 1024)


def _make_cost_kernel(t_steps, tn, mp, hw):
    inv_t = 1.0 / float(t_steps)

    def cost_kernel(cm_ref, tgt_ref, out_ref, iou_acc):
        # grid = (n_blocks, T): axis 0 parallel (rows), axis 1 arbitrary (time).
        t = pl.program_id(1)

        @pl.when(t == 0)
        def _():
            out_ref[...] = jnp.zeros_like(out_ref)
            iou_acc[...] = jnp.zeros_like(iou_acc)

        # [long ; short] mask logits as one (2*tn, hw) slab.
        # Elementwise math stays f32 (v5e has no bf16 VPU/EUP lanes).
        logits = cm_ref[0].astype(jnp.float32).reshape(2 * tn, hw)
        sig = jax.nn.sigmoid(logits)                    # (2*tn, hw) f32
        tg = tgt_ref[0]                                 # (mp, hw) bf16, exact 0/1

        # Single merged NT matmul on the MXU: bf16 operands, f32 accumulate,
        # contracting last axes (no explicit transpose of the target tile).
        num = 2.0 * lax.dot_general(
            sig.astype(jnp.bfloat16), tg,
            dimension_numbers=(((1,), (1,)), ((), ())),
            preferred_element_type=jnp.float32)          # (2*tn, mp)

        row_sum = jnp.sum(sig, axis=-1, keepdims=True)                 # (2*tn, 1)
        tg_sum = jnp.sum(tg.astype(jnp.float32), axis=-1)[None, :]     # (1, mp)
        # EUP approx reciprocal instead of a full (2*tn, mp) divide.
        dice = (num + SMOOTH) * pl.reciprocal(row_sum + tg_sum + SMOOTH,
                                              approx=True)
        out_ref[...] += dice[:tn, :] + dice[tn:, :]      # accumulate dice (long+short)

        # Conditioned IoU (long conditioned on short): small (tn, 1) accumulator,
        # folded into the (tn, mp) output only once at the last time step.
        lm = sig[:tn]
        sm = sig[tn:]
        ml = jnp.where(lm > 0.5, lm, 0.0)
        ms = jnp.where(sm > 0.5, sm, 0.0)
        iou_num = jnp.sum(ml * ms, axis=-1, keepdims=True)             # (tn, 1)
        iou_den = jnp.sum(ml, axis=-1, keepdims=True)
        iou_acc[...] += (iou_num + SMOOTH) * pl.reciprocal(iou_den + SMOOTH,
                                                           approx=True)

        @pl.when(t == t_steps - 1)
        def _():
            out_ref[...] = (-inv_t) * (COST_DICE * out_ref[...]
                                       + COST_CONDITIONED_IOU * iou_acc[...])

    return cost_kernel


def matcher_cost_matrix(long_masks, short_masks, tgt_masks,
                        pred_ref_long, pred_ref_short, target_is_referred):
    """Full [N, M] matching cost matrix C (dice + conditioned IoU via Pallas,
    tiny K=2 is_referred term in plain JAX).

    long_masks / short_masks : [T, N, HW] float32 mask logits
    tgt_masks                : [T, M, HW] float32 binary targets
    pred_ref_long/short      : [T, N, 2]  float32 reference logits
    target_is_referred       : [T, M, 2]  float32 one-hot reference targets
    """
    T, N, HW = long_masks.shape
    M = tgt_masks.shape[1]

    # Pad rows to a multiple of 8 and target columns to a multiple of 128:
    # lane-dense (N, MP) output + clean (8,128) tiling.  Padded rows/cols give
    # finite garbage costs and are sliced off below.
    n_pad = (-N) % 8
    m_pad = (-M) % 128
    Np, Mp = N + n_pad, M + m_pad

    # One bf16 input stream for both mask heads: [T, 2, Np, HW].
    cm = jnp.stack([long_masks, short_masks], axis=1)
    if n_pad:
        cm = jnp.pad(cm, ((0, 0), (0, 0), (0, n_pad), (0, 0)))
    cm = cm.astype(jnp.bfloat16)

    tg = tgt_masks
    if m_pad:
        tg = jnp.pad(tg, ((0, 0), (0, m_pad), (0, 0)))
    tg = tg.astype(jnp.bfloat16)     # binary values are exact in bf16

    tn = _pick_block_n(Np)
    nb = Np // tn
    kernel = _make_cost_kernel(T, tn, Mp, HW)

    grid_spec = pltpu.PrefetchScalarGridSpec(
        num_scalar_prefetch=0,
        grid=(nb, T),
        in_specs=[
            pl.BlockSpec((1, 2, tn, HW), lambda i, t: (t, 0, i, 0)),
            pl.BlockSpec((1, Mp, HW), lambda i, t: (t, 0, 0)),
        ],
        out_specs=pl.BlockSpec((tn, Mp), lambda i, t: (i, 0)),
        scratch_shapes=[pltpu.VMEM((tn, 1), jnp.float32)],
    )

    cost_estimate = pl.CostEstimate(
        flops=int(2 * T * (2 * Np) * Mp * HW),
        transcendentals=int(T * 2 * Np * HW),
        bytes_accessed=int(T * (2 * Np + Mp) * HW * 2 + Np * Mp * 4),
    )

    mask_cost = pl.pallas_call(
        kernel,
        out_shape=jax.ShapeDtypeStruct((Np, Mp), jnp.float32),
        grid_spec=grid_spec,
        compiler_params=pltpu.CompilerParams(
            dimension_semantics=("parallel", "arbitrary"),
            vmem_limit_bytes=_vmem_limit_bytes(tn, Mp, HW)),
        cost_estimate=cost_estimate,
    )(cm, tg)

    mask_cost = mask_cost[:N, :M]

    # is_referred cost hoisted out of the kernel (2-lane / K=2 degenerate path,
    # O(T*N*M) flops -- trivially cheap in XLA).
    prl = jax.nn.softmax(pred_ref_long, axis=-1)      # [T, N, 2]
    prs = jax.nn.softmax(pred_ref_short, axis=-1)
    ref_cost = -jnp.einsum('tnc,tmc->nm', prl + prs, target_is_referred) / T

    return COST_IS_REFERRED * ref_cost + mask_cost


def reference_cost_matrix(long_masks, short_masks, tgt_masks,
                          pred_ref_long, pred_ref_short, target_is_referred):
    """Plain-JAX f32 reference mirroring the PyTorch math, for verification."""
    lm = jax.nn.sigmoid(long_masks)
    sm = jax.nn.sigmoid(short_masks)
    tg = tgt_masks

    def dice(pred):
        num = 2.0 * jnp.einsum('tnh,tmh->tnm', pred, tg)
        den = pred.sum(-1)[:, :, None] + tg.sum(-1)[:, None, :]
        return ((num + SMOOTH) / (den + SMOOTH)).mean(0)

    dice_cost = -dice(lm) - dice(sm)

    ml = jnp.where(lm > 0.5, lm, 0.0)
    ms = jnp.where(sm > 0.5, sm, 0.0)
    iou = ((ml * ms).sum(-1, keepdims=True) + SMOOTH) / (ml.sum(-1, keepdims=True) + SMOOTH)
    iou_cost = -iou.mean(0)

    prl = jax.nn.softmax(pred_ref_long, axis=-1)
    prs = jax.nn.softmax(pred_ref_short, axis=-1)
    ref_cost = -(jnp.einsum('tnc,tmc->tnm', prl + prs, target_is_referred)).mean(0)

    return (COST_IS_REFERRED * ref_cost
            + COST_DICE * dice_cost
            + COST_CONDITIONED_IOU * iou_cost)


def brute_force_lsa(cost):
    """Exact minimum-cost 1-to-1 assignment (tiny sizes only)."""
    # TODO(synk): linear_sum_assignment (Hungarian) has no Pallas equivalent;
    # it runs on host over the tiny per-batch cost blocks.
    q, m = cost.shape
    best_rows, best_val = None, np.inf
    for perm in itertools.permutations(range(q), m):
        val = float(sum(cost[perm[j], j] for j in range(m)))
        if val < best_val:
            best_val, best_rows = val, perm
    rows = np.asarray(best_rows, dtype=np.int64)
    cols = np.arange(m, dtype=np.int64)
    order = np.argsort(rows)
    return rows[order], cols[order]


if __name__ == "__main__":
    key = jax.random.PRNGKey(0)
    T, B, Q, H, W = 2, 2, 8, 16, 16
    N, HW = B * Q, H * W

    # Synthetic targets: num_traj_per_batch = [1, 2], referred idx per batch = [0, 1].
    num_traj_per_batch = [1, 2]
    referred_idx = [0, 1]
    total_traj = sum(num_traj_per_batch)

    k1, k2, k3, k4, k5 = jax.random.split(key, 5)
    # Predicted mask logits, already at target resolution (bilinear interpolation
    # in the reference module is the identity when sizes match).
    long_masks = jax.random.normal(k1, (T, B, Q, H, W), jnp.float32).reshape(T, N, HW)
    short_masks = jax.random.normal(k2, (T, B, Q, H, W), jnp.float32).reshape(T, N, HW)
    pred_ref_long = jax.random.normal(k3, (T, B, Q, 2), jnp.float32).reshape(T, N, 2)
    pred_ref_short = jax.random.normal(k4, (T, B, Q, 2), jnp.float32).reshape(T, N, 2)

    # Binary ground-truth masks [T, total_traj, HW].
    tgt_masks = (jax.random.uniform(k5, (T, total_traj, H, W)) > 0.5).astype(
        jnp.float32).reshape(T, total_traj, HW)

    # target_is_referred: [0,1] everywhere, [1,0] at offset-adjusted referred indices.
    offsets = np.concatenate(([0], np.cumsum(num_traj_per_batch)[:-1]))
    ref_indices = [int(r) + int(o) for r, o in zip(referred_idx, offsets)]
    tir = np.tile(np.array([0.0, 1.0], np.float32), (T, total_traj, 1))
    for ri in ref_indices:
        tir[:, ri, :] = np.array([1.0, 0.0], np.float32)
    target_is_referred = jnp.asarray(tir)

    # --- Pallas kernel: full cost matrix ---
    C = matcher_cost_matrix(long_masks, short_masks, tgt_masks,
                            pred_ref_long, pred_ref_short, target_is_referred)
    C = jax.block_until_ready(C)

    # Verify against the plain-JAX f32 reference (tolerance loosened for the
    # bf16 MXU operands + approximate reciprocals used in the kernel).
    C_ref = reference_cost_matrix(long_masks, short_masks, tgt_masks,
                                  pred_ref_long, pred_ref_short, target_is_referred)
    assert np.allclose(np.asarray(C), np.asarray(C_ref), atol=3e-2), "kernel mismatch"

    # --- glue: split per batch and assign (as in HungarianMatcher.forward) ---
    C_np = np.asarray(C).reshape(B, Q, total_traj)
    indices = []
    col = 0
    for b, m in enumerate(num_traj_per_batch):
        cost_b = C_np[b][:, col:col + m]
        indices.append(brute_force_lsa(cost_b))
        col += m

    _ = [(jnp.asarray(i, jnp.int64 if jax.config.jax_enable_x64 else jnp.int32),
          jnp.asarray(j, jnp.int64 if jax.config.jax_enable_x64 else jnp.int32))
         for i, j in indices]

    print("KERNEL_OK")
</pallas_src>

<mosaic_0001>
module attributes {stable_mosaic.version = 11 : i64} {
  func.func @cost_kernel(%arg0: i32, %arg1: i32, %arg2: memref<1x2x16x256xbf16, #tpu.memory_space<vmem>>, %arg3: memref<1x128x256xbf16, #tpu.memory_space<vmem>>, %arg4: memref<16x128xf32, #tpu.memory_space<vmem>>, %arg5: memref<16x1xf32, #tpu.memory_space<vmem>>) attributes {dimension_semantics = [#tpu.dimension_semantics<parallel>, #tpu.dimension_semantics<arbitrary>], iteration_bounds = array<i64: 1, 2>, scalar_prefetch = 0 : i64, scratch_operands = 1 : i64, tpu.core_type = #tpu.core_type<tc>, window_params = [{transform_indices = @transform_0, window_bounds = array<i64: 1, 2, 16, 256>}, {transform_indices = @transform_1, window_bounds = array<i64: 1, 128, 256>}, {transform_indices = @transform_2, window_bounds = array<i64: 16, 128>}]} {
    %c0_i32 = arith.constant 0 : i32
    %0 = arith.cmpi eq, %arg1, %c0_i32 : i32
    %1 = arith.extui %0 : i1 to i32
    %c0_i32_0 = arith.constant 0 : i32
    %2 = arith.cmpi ne, %1, %c0_i32_0 : i32
    scf.if %2 {
      %cst_30 = arith.constant 0.000000e+00 : f32
      %65 = vector.broadcast %cst_30 : f32 to vector<16x128xf32>
      %c0_31 = arith.constant 0 : index
      %c0_32 = arith.constant 0 : index
      %66 = vector.load %arg4[%c0_31, %c0_32] : memref<16x128xf32, #tpu.memory_space<vmem>>, vector<16x128xf32>
      tpu.vector_store %arg4[%c0_31, %c0_32], %65 {strides = array<i32>} : memref<16x128xf32, #tpu.memory_space<vmem>>, vector<16x128xf32>,
      %cst_33 = arith.constant 0.000000e+00 : f32
      %67 = vector.broadcast %cst_33 : f32 to vector<16x1xf32>
      %c0_34 = arith.constant 0 : index
      %c0_35 = arith.constant 0 : index
      %68 = vector.load %arg5[%c0_34, %c0_35] : memref<16x1xf32, #tpu.memory_space<vmem>>, vector<16x1xf32>
      tpu.vector_store %arg5[%c0_34, %c0_35], %67 {strides = array<i32>} : memref<16x1xf32, #tpu.memory_space<vmem>>, vector<16x1xf32>,
    } else {
    }
    %c0 = arith.constant 0 : index
    %c0_1 = arith.constant 0 : index
    %c0_2 = arith.constant 0 : index
    %c0_3 = arith.constant 0 : index
    %3 = vector.load %arg2[%c0, %c0_1, %c0_2, %c0_3] : memref<1x2x16x256xbf16, #tpu.memory_space<vmem>>, vector<1x2x16x256xbf16>
    %4 = vector.shape_cast %3 : vector<1x2x16x256xbf16> to vector<2x16x256xbf16>
    %5 = arith.extf %4 : vector<2x16x256xbf16> to vector<2x16x256xf32>
    %6 = vector.shape_cast %5 : vector<2x16x256xf32> to vector<32x256xf32>
    %7 = arith.negf %6 : vector<32x256xf32>
    %8 = math.exp %7 : vector<32x256xf32>
    %cst = arith.constant 1.000000e+00 : f32
    %9 = vector.broadcast %cst : f32 to vector<32x256xf32>
    %10 = arith.addf %9, %8 : vector<32x256xf32>
    %11 = arith.divf %9, %10 : vector<32x256xf32>
    %c0_4 = arith.constant 0 : index
    %c0_5 = arith.constant 0 : index
    %c0_6 = arith.constant 0 : index
    %12 = vector.load %arg3[%c0_4, %c0_5, %c0_6] : memref<1x128x256xbf16, #tpu.memory_space<vmem>>, vector<1x128x256xbf16>
    %13 = vector.shape_cast %12 : vector<1x128x256xbf16> to vector<128x256xbf16>
    %14 = arith.truncf %11 : vector<32x256xf32> to vector<32x256xbf16>
    %cst_7 = arith.constant dense<0.000000e+00> : vector<32x128xf32>
    %15 = tpu.matmul %14, %13, %cst_7 {dimension_numbers = #tpu.dot_dimension_numbers<[1], [1], [0], [0], [0, 0, 1, 0], [], []>} : vector<32x256xbf16>, vector<128x256xbf16>, vector<32x128xf32> -> vector<32x128xf32>
    %cst_8 = arith.constant 2.000000e+00 : f32
    %16 = vector.broadcast %cst_8 : f32 to vector<32x128xf32>
    %17 = arith.mulf %16, %15 : vector<32x128xf32>
    %cst_9 = arith.constant dense<0.000000e+00> : vector<32xf32>
    %18 = vector.multi_reduction <add>, %11, %cst_9 [1] : vector<32x256xf32> to vector<32xf32>
    %19 = vector.shape_cast %18 : vector<32xf32> to vector<32x1xf32>
    %20 = arith.extf %13 : vector<128x256xbf16> to vector<128x256xf32>
    %cst_10 = arith.constant dense<0.000000e+00> : vector<128xf32>
    %21 = vector.multi_reduction <add>, %20, %cst_10 [1] : vector<128x256xf32> to vector<128xf32>
    %22 = vector.shape_cast %21 : vector<128xf32> to vector<1x128xf32>
    %cst_11 = arith.constant 1.000000e+00 : f32
    %23 = vector.broadcast %cst_11 : f32 to vector<32x128xf32>
    %24 = arith.addf %17, %23 : vector<32x128xf32>
    %25 = vector.broadcast %19 : vector<32x1xf32> to vector<32x128xf32>
    %26 = vector.broadcast %22 : vector<1x128xf32> to vector<32x128xf32>
    %27 = arith.addf %25, %26 : vector<32x128xf32>
    %cst_12 = arith.constant 1.000000e+00 : f32
    %28 = vector.broadcast %cst_12 : f32 to vector<32x128xf32>
    %29 = arith.addf %27, %28 : vector<32x128xf32>
    %30 = tpu.reciprocal %29 {approx = true} : vector<32x128xf32> -> vector<32x128xf32>
    %31 = arith.mulf %24, %30 : vector<32x128xf32>
    %c0_13 = arith.constant 0 : index
    %c0_14 = arith.constant 0 : index
    %32 = vector.load %arg4[%c0_13, %c0_14] : memref<16x128xf32, #tpu.memory_space<vmem>>, vector<16x128xf32>
    %33 = vector.extract_strided_slice %31 {offsets = [0, 0], sizes = [16, 128], strides = [1, 1]} : vector<32x128xf32> to vector<16x128xf32>
    %34 = vector.extract_strided_slice %31 {offsets = [16, 0], sizes = [16, 128], strides = [1, 1]} : vector<32x128xf32> to vector<16x128xf32>
    %35 = arith.addf %33, %34 : vector<16x128xf32>
    %36 = arith.addf %32, %35 : vector<16x128xf32>
    %c0_15 = arith.constant 0 : index
    %c0_16 = arith.constant 0 : index
    %37 = vector.load %arg4[%c0_15, %c0_16] : memref<16x128xf32, #tpu.memory_space<vmem>>, vector<16x128xf32>
    tpu.vector_store %arg4[%c0_15, %c0_16], %36 {strides = array<i32>} : memref<16x128xf32, #tpu.memory_space<vmem>>, vector<16x128xf32>,
    %38 = vector.extract_strided_slice %11 {offsets = [0, 0], sizes = [16, 256], strides = [1, 1]} : vector<32x256xf32> to vector<16x256xf32>
    %39 = vector.extract_strided_slice %11 {offsets = [16, 0], sizes = [16, 256], strides = [1, 1]} : vector<32x256xf32> to vector<16x256xf32>
    %cst_17 = arith.constant 5.000000e-01 : f32
    %40 = vector.broadcast %cst_17 : f32 to vector<16x256xf32>
    %41 = arith.cmpf ogt, %38, %40 : vector<16x256xf32>
    %cst_18 = arith.constant 0.000000e+00 : f32
    %42 = vector.broadcast %cst_18 : f32 to vector<16x256xf32>
    %43 = arith.select %41, %38, %42 : vector<16x256xi1>, vector<16x256xf32>
    %cst_19 = arith.constant 5.000000e-01 : f32
    %44 = vector.broadcast %cst_19 : f32 to vector<16x256xf32>
    %45 = arith.cmpf ogt, %39, %44 : vector<16x256xf32>
    %cst_20 = arith.constant 0.000000e+00 : f32
    %46 = vector.broadcast %cst_20 : f32 to vector<16x256xf32>
    %47 = arith.select %45, %39, %46 : vector<16x256xi1>, vector<16x256xf32>
    %48 = arith.mulf %43, %47 : vector<16x256xf32>
    %cst_21 = arith.constant dense<0.000000e+00> : vector<16xf32>
    %49 = vector.multi_reduction <add>, %48, %cst_21 [1] : vector<16x256xf32> to vector<16xf32>
    %50 = vector.shape_cast %49 : vector<16xf32> to vector<16x1xf32>
    %cst_22 = arith.constant dense<0.000000e+00> : vector<16xf32>
    %51 = vector.multi_reduction <add>, %43, %cst_22 [1] : vector<16x256xf32> to vector<16xf32>
    %52 = vector.shape_cast %51 : vector<16xf32> to vector<16x1xf32>
    %c0_23 = arith.constant 0 : index
    %c0_24 = arith.constant 0 : index
    %53 = vector.load %arg5[%c0_23, %c0_24] : memref<16x1xf32, #tpu.memory_space<vmem>>, vector<16x1xf32>
    %cst_25 = arith.constant 1.000000e+00 : f32
    %54 = vector.broadcast %cst_25 : f32 to vector<16x1xf32>
    %55 = arith.addf %50, %54 : vector<16x1xf32>
    %cst_26 = arith.constant 1.000000e+00 : f32
    %56 = vector.broadcast %cst_26 : f32 to vector<16x1xf32>
    %57 = arith.addf %52, %56 : vector<16x1xf32>
    %58 = tpu.reciprocal %57 {approx = true} : vector<16x1xf32> -> vector<16x1xf32>
    %59 = arith.mulf %55, %58 : vector<16x1xf32>
    %60 = arith.addf %53, %59 : vector<16x1xf32>
    %c0_27 = arith.constant 0 : index
    %c0_28 = arith.constant 0 : index
    %61 = vector.load %arg5[%c0_27, %c0_28] : memref<16x1xf32, #tpu.memory_space<vmem>>, vector<16x1xf32>
    tpu.vector_store %arg5[%c0_27, %c0_28], %60 {strides = array<i32>} : memref<16x1xf32, #tpu.memory_space<vmem>>, vector<16x1xf32>,
    %c1_i32 = arith.constant 1 : i32
    %62 = arith.cmpi eq, %arg1, %c1_i32 : i32
    %63 = arith.extui %62 : i1 to i32
    %c0_i32_29 = arith.constant 0 : i32
    %64 = arith.cmpi ne, %63, %c0_i32_29 : i32
    scf.if %64 {
      %c0_30 = arith.constant 0 : index
      %c0_31 = arith.constant 0 : index
      %65 = vector.load %arg4[%c0_30, %c0_31] : memref<16x128xf32, #tpu.memory_space<vmem>>, vector<16x128xf32>
      %cst_32 = arith.constant 1.000000e+00 : f32
      %66 = vector.broadcast %cst_32 : f32 to vector<16x128xf32>
      %67 = arith.mulf %66, %65 : vector<16x128xf32>
      %c0_33 = arith.constant 0 : index
      %c0_34 = arith.constant 0 : index
      %68 = vector.load %arg5[%c0_33, %c0_34] : memref<16x1xf32, #tpu.memory_space<vmem>>, vector<16x1xf32>
      %cst_35 = arith.constant 1.000000e+00 : f32
      %69 = vector.broadcast %cst_35 : f32 to vector<16x1xf32>
      %70 = arith.mulf %69, %68 : vector<16x1xf32>
      %71 = vector.broadcast %70 : vector<16x1xf32> to vector<16x128xf32>
      %72 = arith.addf %67, %71 : vector<16x128xf32>
      %cst_36 = arith.constant -5.000000e-01 : f32
      %73 = vector.broadcast %cst_36 : f32 to vector<16x128xf32>
      %74 = arith.mulf %73, %72 : vector<16x128xf32>
      %c0_37 = arith.constant 0 : index
      %c0_38 = arith.constant 0 : index
      %75 = vector.load %arg4[%c0_37, %c0_38] : memref<16x128xf32, #tpu.memory_space<vmem>>, vector<16x128xf32>
      tpu.vector_store %arg4[%c0_37, %c0_38], %74 {strides = array<i32>} : memref<16x128xf32, #tpu.memory_space<vmem>>, vector<16x128xf32>,
    } else {
    }
    return
  }
  func.func @transform_0(%arg0: i32, %arg1: i32) -> (i32, i32, i32, i32) {
    %c0_i32 = arith.constant 0 : i32
    %c0_i32_0 = arith.constant 0 : i32
    %c0_i32_1 = arith.constant 0 : i32
    return %arg1, %c0_i32, %arg0, %c0_i32_0 : i32, i32, i32, i32
  }
  func.func @transform_1(%arg0: i32, %arg1: i32) -> (i32, i32, i32) {
    %c0_i32 = arith.constant 0 : i32
    %c0_i32_0 = arith.constant 0 : i32
    %c0_i32_1 = arith.constant 0 : i32
    return %arg1, %c0_i32, %c0_i32_0 : i32, i32, i32
  }
  func.func @transform_2(%arg0: i32, %arg1: i32) -> (i32, i32) {
    %c0_i32 = arith.constant 0 : i32
    %c0_i32_0 = arith.constant 0 : i32
    return %arg0, %c0_i32 : i32, i32
  }
}

</mosaic_0001>

<bundles_post_ra>
// kernel: tpu_custom_call.1
= control target key start
LH: loop header
LB: loop body
LE: loop exit
PB: predicated region body
PF: predicated region fallthrough
CT: control target
= control target key end

     0   :  { %7 = vsyncpa [#allocation4], 0  ;;  %s1557_s0 = inlined_call_operand.hbm [shape: bf16[2,2,16,256], index: 0, kind: input, shape index: {}]   ;;  %s1558_s1 = inlined_call_operand.hbm [shape: bf16[2,128,256], index: 1, kind: input, shape index: {}]   ;;  %s1559_s2 = inlined_call_operand.hbm [shape: f32[16,128], index: 2, kind: output, shape index: {}]  }
   0x1   :  { %9 = vsyncpa [#allocation4 + $0x1], 0 }
   0x2   :  { %10 = vsyncpa [#allocation7], 0 }
   0x3   :  { %12 = vsyncpa [#allocation7 + $0x1], 0 }
   0x4   :  { %13 = vsyncpa [#allocation5], 0  ;;  %s1231_s9 = smov 0   ;;  %s1233_s10 = smov 0  }
   0x5   :  { %s1235_s11 = smov 0   ;;  %s1237_s12 = smov 0  }
   0x6   :  { %s1239_s13 = smov 0   ;;  %s1241_s14 = smov 0  }
   0x7 LB: > { %s867_s15 = sadd.s32 4294967295, %s1205_s14   ;;  %s28_s16 = sadd.s32 1, %s1201_s13  ;;  %s1205_s14 = sphi %s1241_s14, %s19_s14   ;;  %s1201_s13 = sphi %s1239_s13, %s1571_s13   ;;  %s1197_s12 = sphi %s1237_s12, %s1570_s12   ;;  %s1193_s11 = sphi %s1235_s11, %s1569_s11   ;;  %s1189_s10 = sphi %s1233_s10, %s1568_s10   ;;  %s1185_s9 = sphi %s1231_s9, %s1567_s9  }
   0x8   : > { %p29_p0 = scmp.ge.s32.totalorder %s28_s16, 2  ;;  %s40_s17 = sadd.s32 1, %s1193_s11 }
   0x9   : > { %p47_p1 = scmp.ne.s32.totalorder %s1193_s11, %s1189_s10  ;;  %p48_p2 = scmp.eq.s32.totalorder %s1205_s14, 0 }
   0xa   : > { %s1573_s16 = smov (%p29_p0, %s28_s16), 0  ;;  %p53_p4 = scmp.ne.s32.totalorder %s1189_s10, %s1185_s9 }
   0xb   : > { %p1267_p3 = por %p48_p2, %p47_p1  ;;  %s35_s19 = ssub.s32 %s1201_s13, %s1573_s16 }
   0xc   : > { %p54_p5 = scmp.eq.s32.totalorder %s867_s15, 0  ;;  %p38_p6 = scmp.eq.s32.totalorder %s35_s19, 0 }
   0xd   : > { %p942_p8 = scmp.lt.s32.totalorder %s1205_s14, 2  ;;  %s1285_s22 = sand.u32 1, %s1193_s11  }
   0xe   : > { %p1276_p7 = por %p54_p5, %p53_p4  ;;  %s909_s23 = sshll.u32 %s1201_s13, 9 }
   0xf   : > { %s1282_s21 = scalar_select %p38_p6, %s1193_s11, %s40_s17  }
  0x10   : > { %s1562_s20 = scalar_select %p1276_p7, 1, 0 }
  0x11   : > { %s870_s24 = sshll.u32 %s1285_s22, 5  ;;  %s1292_s27 = scalar_lea.hbm %s1557_s0, %s909_s23 }
  0x12   : > { %s133_s28 = scalar_lea.vmem [#allocation3], %s870_s24  ;;  %p1296_p9 = pnand %p942_p8, %p1267_p3 }
  0x13   : > { %s143_s29 = sshll.u32 %s133_s28, 4  ;;  %s130_s3 = scalar_lea.sflag [#allocation4], %s1285_s22  ;;  %s1300_s29 = int_to_ptr.vmem [resolvable:$true] %s143_s29 }
  0x14   : > { %s1061_s4 = scalar_lea.hbm %s1292_s27, 512  ;;  %p1063_p11 = pneg %p1296_p9 }
  0x15   : > { %p1062_p10 = scmp.ne.s32.totalorder %s1292_s27, %s1061_s4  ;;  %s1066_s7 = scalar_lea.hbm %s1557_s0, 1024 }
  0x16   : > { %p1067_p0 = scmp.lt.u32.totalorder %s1292_s27, %s1557_s0  ;;  %p1068_p1 = scmp.lt.u32.totalorder %s1066_s7, %s1061_s4 }
  0x17   : > { %p1064_p12 = pnand %p1063_p11, %p1062_p10  ;;  %p1070_p3 = scmp.lt.u32.totalorder %s1061_s4, %s1292_s27 }
  0x18   : > { %p1069_p2 = por %p1068_p1, %p1067_p0 }
  0x19   : > { %p1065_p13 = pneg %p1064_p12 }
  0x1a   : > { %p1071_p4 = por %p1070_p3, %p1069_p2 }
  0x1c   : > { %p1072_p5 = pnand %p1071_p4, %p1065_p13 }
  0x1e   : > { %1075 = shalt.err (!%p1072_p5)
}
  0x1f   : > { %s1076_s17 = scalar_lea.vmem %s1300_s29, 512  ;;  %s1207_s18 = smov [#allocation3]  }
  0x20   : > { %p1077_p6 = scmp.ne.s32.totalorder %s1300_s29, %s1076_s17  ;;  %s1081_s19 = sshll.u32 %s1207_s18, 4  ;;  %s1082_s19 = int_to_ptr.vmem [resolvable:$false] %s1081_s19 }
  0x21   : > { %s1083_s23 = scalar_lea.vmem %s1082_s19, 1024  ;;  %p1084_p12 = scmp.lt.s32.totalorder %s1300_s29, %s1082_s19 }
  0x22   : > { %p1079_p8 = pnand %p1077_p6, %p1063_p11  ;;  %p1085_p0 = scmp.lt.s32.totalorder %s1083_s23, %s1076_s17 }
  0x24   : > { %p1080_p10 = pneg %p1079_p8  ;;  %p1086_p1 = por %p1085_p0, %p1084_p12 }
  0x26   : > { %p1087_p2 = pnand %p1086_p1, %p1080_p10 }
  0x28   : > { %1090 = shalt.err (!%p1087_p2)
}
  0x29   : > { %s1208_s24 = smov 128   ;;  %s1209_s25 = smov 8  }
  0x2a   : > { %938 = dma.hbm_to_vmem [thread:$0]  (!%p1296_p9), %s1292_s27, 512, %s1300_s29, %s130_s3, %s1208_s24, %s1208_s24, %s1209_s25  }
  0x2b   : > { %p876_p13 = scmp.ge.s32.totalorder %s1205_s14, 1  ;;  %p172_p3 = scmp.lt.s32.totalorder %s1205_s14, 3 }
  0x2c   : > { %s873_s26 = sshll.u32 %s1285_s22, 7  ;;  %s910_s4 = sshll.u32 %s1201_s13, 11 }
  0x2d   : > { %p1336_p4 = pnand %p876_p13, %p172_p3  ;;  %s157_s5 = scalar_lea.vmem [#allocation6], %s873_s26 }
  0x2e   : > { %s164_s6 = sshll.u32 %s157_s5, 4  ;;  %s1344_s9 = scalar_lea.hbm %s1558_s1, %s910_s4  ;;  %s1346_s6 = int_to_ptr.vmem [resolvable:$true] %s164_s6 }
  0x2f   : > { %s154_s27 = scalar_lea.sflag [#allocation7], %s1285_s22  ;;  %s1091_s29 = scalar_lea.hbm %s1344_s9, 2048 }
  0x30   : > { %p1092_p5 = scmp.ne.s32.totalorder %s1344_s9, %s1091_s29  ;;  %s1096_s18 = scalar_lea.hbm %s1558_s1, 4096 }
  0x31   : > { %p1097_p10 = scmp.lt.u32.totalorder %s1344_s9, %s1558_s1  ;;  %p1098_p12 = scmp.lt.u32.totalorder %s1096_s18, %s1091_s29 }
  0x32   : > { %p1094_p6 = pnand %p1092_p5, %p1063_p11  ;;  %p1100_p1 = scmp.lt.u32.totalorder %s1091_s29, %s1344_s9 }
  0x33   : > { %p1099_p0 = por %p1098_p12, %p1097_p10 }
  0x34   : > { %p1095_p8 = pneg %p1094_p6 }
  0x35   : > { %p1101_p2 = por %p1100_p1, %p1099_p0 }
  0x37   : > { %p1102_p13 = pnand %p1101_p2, %p1095_p8 }
  0x39   : > { %1105 = shalt.err (!%p1102_p13)
}
  0x3a   : > { %s1106_s26 = scalar_lea.vmem %s1346_s6, 2048  ;;  %s1210_s4 = smov [#allocation6]  }
  0x3b   : > { %p1107_p3 = scmp.ne.s32.totalorder %s1346_s6, %s1106_s26  ;;  %s1111_s5 = sshll.u32 %s1210_s4, 4  ;;  %s1112_s5 = int_to_ptr.vmem [resolvable:$false] %s1111_s5 }
  0x3c   : > { %s1113_s7 = scalar_lea.vmem %s1112_s5, 4096  ;;  %p1114_p7 = scmp.lt.s32.totalorder %s1346_s6, %s1112_s5 }
  0x3d   : > { %p1109_p5 = pnand %p1107_p3, %p1063_p11  ;;  %p1115_p10 = scmp.lt.s32.totalorder %s1113_s7, %s1106_s26 }
  0x3f   : > { %p1110_p6 = pneg %p1109_p5  ;;  %p1116_p12 = por %p1115_p10, %p1114_p7 }
  0x41   : > { %p1117_p0 = pnand %p1116_p12, %p1110_p6 }
  0x43   : > { %1120 = shalt.err (!%p1117_p0)
}
  0x44   : > { %941 = dma.hbm_to_vmem [thread:$0]  (!%p1296_p9), %s1344_s9, 2048, %s1346_s6, %s154_s27, %s1208_s24, %s1208_s24, %s1209_s25  }
  0x45   : > { %176 = sbr.rel (%p1336_p4) target bundleno = 470 (0x1d6), region = 28  ;;  %s178_s8 = sand.u32 (!%p1336_p4), 1, %s1189_s10  }
  0x46   : > { %s877_s29 = sshll.u32 (!%p1336_p4), %s178_s8, 5  ;;  %s179_s3 = scalar_lea.sflag (!%p1336_p4), [#allocation4], %s178_s8 }
  0x47   : > { %s1380_s17 = scalar_lea.vmem (!%p1336_p4), [#allocation3], %s877_s29  ;;  %p1565_p7 = scmp.ne.s32.totalorder (!%p1336_p4), %s1562_s20, 0 }
  0x4c   : > { %1172 = dma.done.wait (%p1565_p7), %s179_s3, 512  }
  0x4d   : > { %1174 = vsyncadd (%p1565_p7), %s179_s3, 4294966784  ;;  %s878_s22 = sshll.u32 %s178_s8, 7  ;;  %s188_s30 = scalar_lea.sflag [#allocation7], %s178_s8 }
  0x4e   : > { %s1386_s18 = scalar_lea.vmem [#allocation6], %s878_s22 }
  0x4f   : > { %1176 = dma.done.wait (%p1565_p7), %s188_s30, 2048  }
  0x50   : > { %1178 = vsyncadd (%p1565_p7), %s188_s30, 4294965248  ;;  %p879_p9 = scmp.ne.s32.totalorder %s1197_s12, 0 }
  0x51   : > { %vm221_vm0 = vcmask (!%p879_p9), 7168   ;;  %v1211_v0 = vmov (!%p879_p9), 0.0  }
  0x52   : > { %218 = sbr.rel (%p879_p9) target bundleno = 89 (0x59), region = 40  ;;  %219 = vst [vmem:[#allocation8] sm:$0xff] (!%p879_p9), %v1211_v0  ;;  %220 = vst [vmem:[#allocation8 + $0x8] sm:$0xff] (!%p879_p9), %v1211_v0 }
  0x53   : > { %222 = vst.msk [vmem:[#allocation2] sm:$0xff] (!%p879_p9), %vm221_vm0, %v1211_v0  ;;  %223 = vst.msk [vmem:[#allocation2 + $0x8] sm:$0xff] (!%p879_p9), %vm221_vm0, %v1211_v0 }
  0x59 PF: > { %v284_v1 = vld [vmem:[%s1386_s18] sm:$0xff]  ;;  %v285_v2 = vld [vmem:[%s1386_s18 + $0x8] sm:$0xff]  ;;  %v286_v3 = vld [vmem:[%s1386_s18 + $0x10] sm:$0xff]  ;;  %vm560_vm9 = vcmask 130112   ;;  %vm567_vm10 = vcmask 195712   ;;  %vm574_vm11 = vcmask 261312  }
  0x5a   : > { %v889_v4 = vcombine.high %v284_v1, %v285_v2  ;;  %v888_v5 = vcombine.low %v284_v1, %v285_v2  ;;  %v287_v6 = vld [vmem:[%s1386_s18 + $0x18] sm:$0xff]  ;;  %v453_v7 = vunpack.c.l.bf16 %v286_v3  ;;  %v454_v8 = vunpack.c.h.bf16 %v286_v3  ;;  %v1398_v10 = vld [vmem:[%s1386_s18 + $0x20] sm:$0xff]  ;;  %v1401_v11 = vld [vmem:[%s1386_s18 + $0x28] sm:$0xff]  ;;  %p904_p11 = scmp.ne.s32.totalorder %s1197_s12, 1 }
  0x5b   : > { %v891_v9 = vcombine.high %v286_v3, %v287_v6  ;;  %v890_v13 = vcombine.low %v286_v3, %v287_v6  ;;  %v224_v14 = vld [vmem:[%s1380_s17] sm:$0xff]  ;;  %v225_v15 = vld [vmem:[%s1380_s17 + $0x8] sm:$0xff]  ;;  %v449_v16 = vunpack.c.l.bf16 %v284_v1  ;;  %v450_v17 = vunpack.c.h.bf16 %v284_v1  ;;  %v226_v21 = vld [vmem:[%s1380_s17 + $0x10] sm:$0xff] }
  0x5c   : > { %384 = vmatprep.subr.bf16.mxu0 %v889_v4  ;;  %911 = vmatprep.subr.bf16.mxu1 %v889_v4  ;;  %v487_v12 = vadd.f32 %v454_v8, %v453_v7  ;;  %v893_v18 = vcombine.high %v1398_v10, %v1401_v11  ;;  %v228_v19 = vunpack.c.l.bf16 %v224_v14  ;;  %v229_v20 = vunpack.c.h.bf16 %v224_v14  ;;  %v227_v22 = vld [vmem:[%s1380_s17 + $0x18] sm:$0xff]  ;;  %v290_v49 = vld [vmem:[%s1386_s18 + $0x30] sm:$0xff]  ;;  %v1418_v57 = vld [vmem:[%s1386_s18 + $0x48] sm:$0xff] }
  0x5d   : > { %385 = vmatpush1.bf16.xpose.msra.mxu0 %v888_v5  ;;  %919 = vmatpush1.bf16.xpose.msra.mxu1 %v888_v5  ;;  %v455_v23 = vunpack.c.l.bf16 %v287_v6  ;;  %v230_v24 = vunpack.c.l.bf16 %v225_v15  ;;  %v231_v25 = vunpack.c.h.bf16 %v225_v15  ;;  %v232_v26 = vunpack.c.l.bf16 %v226_v21  ;;  %v291_v45 = vld [vmem:[%s1386_s18 + $0x38] sm:$0xff]  ;;  %v1423_v61 = vld [vmem:[%s1386_s18 + $0x40] sm:$0xff]  ;;  %v1428_v4 = vld [vmem:[%s1386_s18 + $0x50] sm:$0xff] }
  0x5e   : > { %386 = vmatprep.subr.bf16.mxu0 %v891_v9  ;;  %912 = vmatprep.subr.bf16.mxu1 %v891_v9  ;;  %v233_v27 = vunpack.c.h.bf16 %v226_v21  ;;  %v880_v28 = vmul.f32 -1.442695, %v228_v19  ;;  %v881_v29 = vmul.f32 -1.442695, %v229_v20  ;;  %v234_v30 = vunpack.c.l.bf16 %v227_v22  ;;  %v1431_v5 = vld [vmem:[%s1386_s18 + $0x58] sm:$0xff]  ;;  %v1438_v19 = vld [vmem:[%s1386_s18 + $0x68] sm:$0xff] }
  0x5f   : > { %488 = vadd.xlane.f32.xlu1 %v487_v12  ;;  %v235_v31 = vunpack.c.h.bf16 %v227_v22  ;;  %v882_v32 = vmul.f32 -1.442695, %v230_v24  ;;  %v883_v33 = vmul.f32 -1.442695, %v231_v25  ;;  %v884_v34 = vmul.f32 -1.442695, %v232_v26 }
  0x60   : > { %v481_v35 = vadd.f32 %v450_v17, %v449_v16  ;;  %1016 = vpow2.f32 %v881_v29  ;;  %v885_v36 = vmul.f32 -1.442695, %v233_v27  ;;  %v886_v37 = vmul.f32 -1.442695, %v234_v30  ;;  %v1444_v25 = vld [vmem:[%s1386_s18 + $0x60] sm:$0xff] }
  0x61   : > { %v887_v38 = vmul.f32 -1.442695, %v235_v31  ;;  %1018 = vpow2.f32 %v883_v33  ;;  %v456_v39 = vunpack.c.h.bf16 %v287_v6  ;;  %v451_v40 = vunpack.c.l.bf16 %v285_v2 }
  0x62   : > { %482 = vadd.xlane.f32.xlu0 %v481_v35  ;;  %v452_v41 = vunpack.c.h.bf16 %v285_v2  ;;  %1020 = vpow2.f32 %v885_v36  ;;  %v459_v42 = vunpack.c.l.bf16 %v1401_v11  ;;  %v460_v43 = vunpack.c.h.bf16 %v1401_v11  ;;  %v1450_v35 = vld [vmem:[%s1386_s18 + $0x78] sm:$0xff] }
  0x63   : > { %v457_v44 = vunpack.c.l.bf16 %v1398_v10  ;;  %1022 = vpow2.f32 %v887_v38  ;;  %v490_v46 = vadd.f32 %v456_v39, %v455_v23  ;;  %v458_v48 = vunpack.c.h.bf16 %v1398_v10  ;;  %v1454_v38 = vld [vmem:[%s1386_s18 + $0x70] sm:$0xff] }
  0x64   : > { %v484_v47 = vadd.f32 %v452_v41, %v451_v40  ;;  %1024 = vpow2.f32 %v880_v28  ;;  %v496_v50 = vadd.f32 %v460_v43, %v459_v42  ;;  %v463_v51 = vunpack.c.l.bf16 %v291_v45 }
  0x65   : > { %387 = vmatpush1.bf16.xpose.msra.mxu0 %v890_v13  ;;  %920 = vmatpush1.bf16.xpose.msra.mxu1 %v890_v13  ;;  %v464_v52 = vunpack.c.h.bf16 %v291_v45  ;;  %1026 = vpow2.f32 %v882_v32  ;;  %v493_v53 = vadd.f32 %v458_v48, %v457_v44  ;;  %v461_v54 = vunpack.c.l.bf16 %v290_v49 }
  0x66   : > { %388 = vmatprep.subr.bf16.mxu0 %v893_v18  ;;  %913 = vmatprep.subr.bf16.mxu1 %v893_v18  ;;  %v462_v55 = vunpack.c.h.bf16 %v290_v49  ;;  %v892_v56 = vcombine.low %v1398_v10, %v1401_v11  ;;  %1028 = vpow2.f32 %v884_v34  ;;  %v895_v58 = vcombine.high %v290_v49, %v291_v45 }
  0x67   : > { %491 = vadd.xlane.f32.xlu1 %v490_v46  ;;  %485 = vadd.xlane.f32.xlu0 %v484_v47  ;;  %1030 = vpow2.f32 %v886_v37  ;;  %v467_v59 = vunpack.c.l.bf16 %v1418_v57  ;;  %v468_v60 = vunpack.c.h.bf16 %v1418_v57  ;;  %v502_v62 = vadd.f32 %v464_v52, %v463_v51 }
  0x68   : > { %v499_v63 = vadd.f32 %v462_v55, %v461_v54  ;;  %v465_v0 = vunpack.c.l.bf16 %v1423_v61  ;;  %v466_v1 = vunpack.c.h.bf16 %v1423_v61  ;;  %v471_v10 = vunpack.c.l.bf16 %v1431_v5 }
  0x69   : > { %v508_v7 = vadd.f32 %v468_v60, %v467_v59  ;;  %v472_v11 = vunpack.c.h.bf16 %v1431_v5  ;;  %v469_v12 = vunpack.c.l.bf16 %v1428_v4  ;;  %v470_v16 = vunpack.c.h.bf16 %v1428_v4 }
  0x6a   : > { %v1017_v2 = vpop.eup %1016  ;;  %v505_v15 = vadd.f32 %v466_v1, %v465_v0  ;;  %v894_v18 = vcombine.low %v290_v49, %v291_v45  ;;  %v897_v22 = vcombine.high %v1423_v61, %v1418_v57  ;;  %v475_v23 = vunpack.c.l.bf16 %v1438_v19 }
  0x6b   : > { %497 = vadd.xlane.f32.xlu1 %v496_v50  ;;  %494 = vadd.xlane.f32.xlu0 %v493_v53  ;;  %v1019_v3 = vpop.eup %1018  ;;  %v261_v6 = vadd.f32 1.0, %v1017_v2  ;;  %v514_v27 = vadd.f32 %v472_v11, %v471_v10  ;;  %v476_v28 = vunpack.c.h.bf16 %v1438_v19  ;;  %v511_v31 = vadd.f32 %v470_v16, %v469_v12 }
  0x6c   : > { %v1021_v8 = vpop.eup %1020  ;;  %v263_v9 = vadd.f32 1.0, %v1019_v3  ;;  %v473_v32 = vunpack.c.l.bf16 %v1444_v25  ;;  %v474_v33 = vunpack.c.h.bf16 %v1444_v25  ;;  %v479_v37 = vunpack.c.l.bf16 %v1450_v35 }
  0x6d   : > { %389 = vmatpush1.bf16.xpose.msra.mxu0 %v892_v56  ;;  %921 = vmatpush1.bf16.xpose.msra.mxu1 %v892_v56  ;;  %v1023_v13 = vpop.eup %1022  ;;  %1032 = vrcp.f32 %v261_v6  ;;  %v265_v14 = vadd.f32 1.0, %v1021_v8  ;;  %v520_v39 = vadd.f32 %v476_v28, %v475_v23  ;;  %v480_v41 = vunpack.c.h.bf16 %v1450_v35 }
  0x6e   : > { %390 = vmatprep.subr.bf16.mxu0 %v895_v58  ;;  %914 = vmatprep.subr.bf16.mxu1 %v895_v58  ;;  %v1025_v17 = vpop.eup %1024  ;;  %1034 = vrcp.f32 %v263_v9  ;;  %v267_v20 = vadd.f32 1.0, %v1023_v13  ;;  %v517_v40 = vadd.f32 %v474_v33, %v473_v32  ;;  %v896_v42 = vcombine.low %v1423_v61, %v1418_v57 }
  0x6f   : > { %503 = vadd.xlane.f32.xlu1 %v502_v62  ;;  %500 = vadd.xlane.f32.xlu0 %v499_v63  ;;  %v1027_v21 = vpop.eup %1026  ;;  %1036 = vrcp.f32 %v265_v14  ;;  %v260_v30 = vadd.f32 1.0, %v1025_v17  ;;  %v477_v43 = vunpack.c.l.bf16 %v1454_v38  ;;  %v478_v44 = vunpack.c.h.bf16 %v1454_v38 }
  0x70   : > { %v1029_v24 = vpop.eup %1028  ;;  %1038 = vrcp.f32 %v267_v20  ;;  %v262_v26 = vadd.f32 1.0, %v1027_v21  ;;  %v899_v46 = vcombine.high %v1428_v4, %v1431_v5  ;;  %v526_v50 = vadd.f32 %v480_v41, %v479_v37 }
  0x71   : > { %v1031_v29 = vpop.eup %1030  ;;  %v264_v36 = vadd.f32 1.0, %v1029_v24  ;;  %v523_v52 = vadd.f32 %v478_v44, %v477_v43  ;;  %v898_v57 = vcombine.low %v1428_v4, %v1431_v5  ;;  %v901_v59 = vcombine.high %v1444_v25, %v1438_v19 }
  0x72   : > { %1040 = vrcp.f32 %v262_v26  ;;  %v266_v34 = vadd.f32 1.0, %v1031_v29  ;;  %v900_v11 = vcombine.low %v1444_v25, %v1438_v19  ;;  %v903_v12 = vcombine.high %v1454_v38, %v1450_v35 }
  0x73   : > { %509 = vadd.xlane.f32.xlu1 %v508_v7  ;;  %506 = vadd.xlane.f32.xlu0 %v505_v15  ;;  %v549_v21 = vlaneseq  ;;  %vm581_vm12 = vcmask 326912   ;;  %vm588_vm13 = vcmask 392512   ;;  %vm595_vm14 = vcmask 458112  }
  0x74   : > { %1042 = vrcp.f32 %v266_v34  ;;  %vm602_vm15 = vcmask 523712   ;;  %vm609_vm0 = vcmask 589312  }
  0x75   : > { %391 = vmatpush1.bf16.xpose.msra.mxu0 %v894_v18  ;;  %922 = vmatpush1.bf16.xpose.msra.mxu1 %v894_v18  ;;  %1044 = vrcp.f32 %v260_v30  ;;  %v902_v18 = vcombine.low %v1454_v38, %v1450_v35  ;;  %v1476_v23 = vshrl.u32 %v549_v21, 7 }
  0x76   : > { %392 = vmatprep.subr.bf16.mxu0 %v897_v22  ;;  %915 = vmatprep.subr.bf16.mxu1 %v897_v22  ;;  %1046 = vrcp.f32 %v264_v36  ;;  %v1474_v22 = vand.u32 127, %v549_v21 }
  0x77   : > { %515 = vadd.xlane.f32.xlu1 %v514_v27  ;;  %512 = vadd.xlane.f32.xlu0 %v511_v31  ;;  %v1033_v45 = vpop.eup %1032 }
  0x78   : > { %v1035_v47 = vpop.eup %1034  ;;  %vm698_vm5 = vcmp.gt.f32.partialorder %v1033_v45, 0.5  ;;  %v562_v24 = vadd.s32 4294967280, %v1474_v22  ;;  %v569_v25 = vadd.s32 4294967272, %v1474_v22  ;;  %v555_v26 = vadd.s32 4294967288, %v1474_v22 }
  0x79   : > { %v1037_v48 = vpop.eup %1036  ;;  %v301_v49 = vpack.c.bf16 %v1035_v47, %v1033_v45  ;;  %vm700_vm1 = vcmp.gt.f32.partialorder %v1035_v47, 0.5  ;;  %v702_v5 = vsel %vm698_vm5, %v1033_v45, 0.0  ;;  %v553_v28 = vsub.s32 %v1474_v22, %v1476_v23 }
  0x7a   : > { %v1039_v51 = vpop.eup %1038  ;;  %v704_v63 = vsel %vm700_vm1, %v1035_v47, 0.0  ;;  %vm706_vm7 = vcmp.gt.f32.partialorder %v1037_v48, 0.5  ;;  %v565_v29 = vsub.s32 %v562_v24, %v1476_v23  ;;  %v572_v31 = vsub.s32 %v569_v25, %v1476_v23 }
  0x7b   : > { %521 = vadd.xlane.f32.xlu1 %v520_v39  ;;  %518 = vadd.xlane.f32.xlu0 %v517_v40  ;;  %v303_v53 = vpack.c.bf16 %v1039_v51, %v1037_v48  ;;  %vm708_vm4 = vcmp.gt.f32.partialorder %v1039_v51, 0.5  ;;  %v710_v6 = vsel %vm706_vm7, %v1037_v48, 0.0  ;;  %v558_v32 = vsub.s32 %v555_v26, %v1476_v23 }
  0x7c   : > { %v1041_v54 = vpop.eup %1040  ;;  %416 = vmatprep.mubr.bf16.mxu0 %v301_v49  ;;  %v712_v2 = vsel %vm708_vm4, %v1039_v51, 0.0  ;;  %v714_v15 = vmul.f32 %v710_v6, %v702_v5  ;;  %v583_v33 = vadd.s32 4294967256, %v1474_v22  ;;  %v576_v34 = vadd.s32 4294967264, %v1474_v22 }
  0x7d   : > { %393 = vmatpush1.bf16.xpose.msra.mxu0 %v896_v42  ;;  %923 = vmatpush1.bf16.xpose.msra.mxu1 %v896_v42  ;;  %v440_v55 = vadd.f32 %v1041_v54, %v1035_v47  ;;  %vm699_vm2 = vcmp.gt.f32.partialorder %v1041_v54, 0.5  ;;  %v716_v9 = vmul.f32 %v712_v2, %v704_v63  ;;  %v597_v39 = vadd.s32 4294967240, %v1474_v22 }
  0x7e   : > { %394 = vmatprep.subr.bf16.mxu0 %v899_v46  ;;  %916 = vmatprep.subr.bf16.mxu1 %v899_v46  ;;  %v1043_v56 = vpop.eup %1042  ;;  %v703_v0 = vsel %vm699_vm2, %v1041_v54, 0.0  ;;  %v590_v40 = vadd.s32 4294967248, %v1474_v22  ;;  %v586_v43 = vsub.s32 %v583_v33, %v1476_v23  ;;  %v579_v44 = vsub.s32 %v576_v34, %v1476_v23 }
  0x7f   : > { %424 = vmatprep.mubr.bf16.mxu1 %v303_v53  ;;  %527 = vadd.xlane.f32.xlu1 %v526_v50  ;;  %v1045_v58 = vpop.eup %1044  ;;  %vm707_vm3 = vcmp.gt.f32.partialorder %v1043_v56, 0.5  ;;  %v446_v62 = vadd.f32 %v1043_v56, %v1039_v51  ;;  %v726_v7 = vadd.f32 %v704_v63, %v703_v0  ;;  %v600_v49 = vsub.s32 %v597_v39, %v1476_v23 }
  0x80   : > { %524 = vadd.xlane.f32.xlu0 %v523_v52  ;;  %v437_v60 = vadd.f32 %v1045_v58, %v1033_v45  ;;  %v1047_v61 = vpop.eup %1046  ;;  %vm697_vm6 = vcmp.gt.f32.partialorder %v1045_v58, 0.5  ;;  %v711_v1 = vsel %vm707_vm3, %v1043_v56, 0.0  ;;  %v300_v19 = vpack.c.bf16 %v1041_v54, %v1045_v58 }
  0x81   : > { %vm705_vm8 = vcmp.gt.f32.partialorder %v1047_v61, 0.5  ;;  %v443_v3 = vadd.f32 %v1047_v61, %v1037_v48  ;;  %v701_v4 = vsel %vm697_vm6, %v1045_v58, 0.0  ;;  %v715_v8 = vmul.f32 %v711_v1, %v703_v0 }
  0x82   : > { %v709_v10 = vsel %vm705_vm8, %v1047_v61, 0.0  ;;  %v723_v13 = vadd.f32 %v702_v5, %v701_v4  ;;  %v302_v20 = vpack.c.bf16 %v1043_v56, %v1047_v61  ;;  %v593_v50 = vsub.s32 %v590_v40, %v1476_v23 }
  0x83   : > { %441 = vadd.xlane.f32.xlu1 %v440_v55  ;;  %v713_v14 = vmul.f32 %v709_v10, %v701_v4  ;;  %v720_v16 = vadd.f32 %v716_v9, %v715_v8  ;;  %v611_v51 = vadd.s32 4294967224, %v1474_v22  ;;  %v604_v55 = vadd.s32 4294967232, %v1474_v22 }
  0x84   : > { %438 = vadd.xlane.f32.xlu0 %v437_v60  ;;  %v625_v61 = vadd.s32 4294967208, %v1474_v22  ;;  %v618_v1 = vadd.s32 4294967216, %v1474_v22  ;;  %vm616_vm1 = vcmask 654912   ;;  %vm623_vm2 = vcmask 720512  }
  0x85   : > { %395 = vmatpush1.bf16.xpose.msra.mxu0 %v898_v57  ;;  %924 = vmatpush1.bf16.xpose.msra.mxu1 %v898_v57  ;;  %v717_v17 = vadd.f32 %v714_v15, %v713_v14  ;;  %v614_v60 = vsub.s32 %v611_v51, %v1476_v23  ;;  %v607_v0 = vsub.s32 %v604_v55, %v1476_v23  ;;  %vm630_vm3 = vcmask 786112  }
  0x86   : > { %396 = vmatprep.subr.bf16.mxu0 %v901_v59  ;;  %917 = vmatprep.subr.bf16.mxu1 %v901_v59  ;;  %v628_v6 = vsub.s32 %v625_v61, %v1476_v23  ;;  %v621_v10 = vsub.s32 %v618_v1, %v1476_v23  ;;  %v646_v21 = vadd.s32 4294967184, %v1474_v22  ;;  %vm637_vm4 = vcmask 851712  }
  0x87   : > { %447 = vadd.xlane.f32.xlu1 %v446_v62  ;;  %vm644_vm5 = vcmask 917312   ;;  %vm651_vm6 = vcmask 982912   ;;  %vm658_vm7 = vcmask 1048512   ;;  %vm741_vm8 = vcmask 7168  }
  0x88   : > { %444 = vadd.xlane.f32.xlu0 %v443_v3 }
  0x8b   : > { %727 = vadd.xlane.f32.xlu1 %v726_v7  ;;  %v639_v7 = vadd.s32 4294967192, %v1474_v22 }
  0x8c   : > { %724 = vadd.xlane.f32.xlu0 %v723_v13 }
  0x8d   : > { %397 = vmatpush1.bf16.xpose.msra.mxu0 %v900_v11  ;;  %925 = vmatpush1.bf16.xpose.msra.mxu1 %v900_v11  ;;  %v632_v11 = vadd.s32 4294967200, %v1474_v22 }
  0x8e   : > { %398 = vmatprep.subr.bf16.mxu0 %v903_v12  ;;  %918 = vmatprep.subr.bf16.mxu1 %v903_v12 }
  0x8f   : > { %721 = vadd.xlane.f32.xlu1 %v720_v16  ;;  %v642_v16 = vsub.s32 %v639_v7, %v1476_v23 }
  0x90   : > { %718 = vadd.xlane.f32.xlu0 %v717_v17 }
  0x95   : > { %399 = vmatpush1.bf16.xpose.msra.mxu0 %v902_v18  ;;  %926 = vmatpush1.bf16.xpose.msra.mxu1 %v902_v18 }
  0x9c   : > { %417 = vmatmul.mubr.bf16.vlgmr.msra.gmra.mrb[0].mxu0 %v300_v19  ;;  %425 = vmatmul.mubr.bf16.vlgmr.msra.gmra.mrb[0].mxu1 %v302_v20  ;;  %v635_v19 = vsub.s32 %v632_v11, %v1476_v23  ;;  %v653_v20 = vadd.s32 4294967176, %v1474_v22 }
  0xec   : > { %v489_v27 = vpop.xlane.xlu1 %488 }
  0xed   : > { %v566_v36 = vrot.slane %v489_v27, %v565_v29 }
  0xef   : > { %v483_v30 = vpop.xlane.xlu0 %482 }
  0xf0   : > { %v554_v35 = vrot.slane %v483_v30, %v553_v28  ;;  %v656_v30 = vsub.s32 %v653_v20, %v1476_v23 }
  0xf4   : > { %v492_v37 = vpop.xlane.xlu1 %491  ;;  %v486_v38 = vpop.xlane.xlu0 %485 }
  0xf5   : > { %v573_v41 = vrot.slane %v492_v37, %v572_v31  ;;  %v559_v42 = vrot.slane %v486_v38, %v558_v32  ;;  %v649_v31 = vsub.s32 %v646_v21, %v1476_v23 }
  0xf7   : > { %v561_v45 = vsel %vm560_vm9, %v559_v42, %v554_v35 }
  0xf8   : > { %v568_v46 = vsel %vm567_vm10, %v566_v36, %v561_v45  ;;  %v498_v47 = vpop.xlane.xlu1 %497  ;;  %v495_v48 = vpop.xlane.xlu0 %494 }
  0xf9   : > { %v587_v52 = vrot.slane %v498_v47, %v586_v43  ;;  %v575_v53 = vsel %vm574_vm11, %v573_v41, %v568_v46  ;;  %v580_v54 = vrot.slane %v495_v48, %v579_v44 }
  0xfb   : > { %v582_v56 = vsel %vm581_vm12, %v580_v54, %v575_v53  ;;  %v730_v54 = vld [vmem:[#allocation2 + $0x8] sm:$0xff] }
  0xfc   : > { %v504_v57 = vpop.xlane.xlu1 %503  ;;  %v589_v58 = vsel %vm588_vm13, %v587_v52, %v582_v56  ;;  %v501_v59 = vpop.xlane.xlu0 %500 }
  0xfd   : > { %v601_v62 = vrot.slane %v504_v57, %v600_v49  ;;  %v594_v63 = vrot.slane %v501_v59, %v593_v50  ;;  %v729_v59 = vld [vmem:[#allocation2] sm:$0xff] }
  0xff   : > { %v596_v2 = vsel %vm595_vm14, %v594_v63, %v589_v58 }
 0x100   : > { %v510_v3 = vpop.xlane.xlu1 %509  ;;  %v603_v4 = vsel %vm602_vm15, %v601_v62, %v596_v2  ;;  %v507_v5 = vpop.xlane.xlu0 %506 }
 0x101   : > { %v615_v8 = vrot.slane %v510_v3, %v614_v60  ;;  %v608_v9 = vrot.slane %v507_v5, %v607_v0 }
 0x103   : > { %v610_v12 = vsel %vm609_vm0, %v608_v9, %v603_v4 }
 0x104   : > { %v516_v13 = vpop.xlane.xlu1 %515  ;;  %v617_v14 = vsel %vm616_vm1, %v615_v8, %v610_v12  ;;  %v513_v15 = vpop.xlane.xlu0 %512 }
 0x105   : > { %v629_v17 = vrot.slane %v516_v13, %v628_v6  ;;  %v622_v18 = vrot.slane %v513_v15, %v621_v10 }
 0x107   : > { %v624_v24 = vsel %vm623_vm2, %v622_v18, %v617_v14 }
 0x108   : > { %v522_v25 = vpop.xlane.xlu1 %521  ;;  %v631_v26 = vsel %vm630_vm3, %v629_v17, %v624_v24  ;;  %v519_v27 = vpop.xlane.xlu0 %518 }
 0x109   : > { %v643_v28 = vrot.slane %v522_v25, %v642_v16  ;;  %v636_v29 = vrot.slane %v519_v27, %v635_v19 }
 0x10b   : > { %v638_v32 = vsel %vm637_vm4, %v636_v29, %v631_v26  ;;  %v689_v26 = vld [vmem:[#allocation8] sm:$0xff] }
 0x10c   : > { %v528_v33 = vpop.xlane.xlu1 %527  ;;  %v645_v34 = vsel %vm644_vm5, %v643_v28, %v638_v32 }
 0x10d   : > { %v657_v35 = vrot.slane %v528_v33, %v656_v30  ;;  %v525_v36 = vpop.xlane.xlu0 %524  ;;  %v690_v30 = vld [vmem:[#allocation8 + $0x8] sm:$0xff] }
 0x10e   : > { %v650_v37 = vrot.slane %v525_v36, %v649_v31 }
 0x110   : > { %v652_v22 = vsel %vm651_vm6, %v650_v37, %v645_v34  ;;  %v442_v38 = vpop.xlane.xlu1 %441 }
 0x111   : > { %v659_v39 = vsel %vm658_vm7, %v657_v35, %v652_v22  ;;  %v439_v41 = vpop.xlane.xlu0 %438  ;;  %v1212_v35 = vmov (!%p904_p11), 0  }
 0x112   : > { %v674_v40 = vadd.f32 %v659_v39, %v442_v38  ;;  %v673_v42 = vadd.f32 %v659_v39, %v439_v41  ;;  %1060 = vset.pattern.permute.xlu0 (!%p904_p11), %v1212_v35 }
 0x114   : > { %v448_v43 = vpop.xlane.xlu1 %447  ;;  %v677_v62 = vadd.f32 1.0, %v673_v42  ;;  %v678_v0 = vadd.f32 1.0, %v674_v40 }
 0x115   : > { %v676_v44 = vadd.f32 %v659_v39, %v448_v43  ;;  %v445_v45 = vpop.xlane.xlu0 %444 }
 0x116   : > { %v675_v46 = vadd.f32 %v659_v39, %v445_v45 }
 0x117   : > { %v680_v1 = vadd.f32 1.0, %v676_v44 }
 0x118   : > { %v728_v47 = vpop.xlane.xlu1 %727  ;;  %v679_v63 = vadd.f32 1.0, %v675_v46 }
 0x119   : > { %v734_v23 = vadd.f32 1.0, %v728_v47  ;;  %v725_v48 = vpop.xlane.xlu0 %724 }
 0x11a   : > { %v733_v49 = vadd.f32 1.0, %v725_v48 }
 0x11b   : > { %1048 = vrcp.f32 %v734_v23 }
 0x11c   : > { %1050 = vrcp.f32 %v733_v49  ;;  %v722_v50 = vpop.xlane.xlu1 %721 }
 0x11d   : > { %v732_v51 = vadd.f32 1.0, %v722_v50  ;;  %v719_v52 = vpop.xlane.xlu0 %718  ;;  %1052 = vrcp.f32 %v677_v62 }
 0x11e   : > { %v731_v55 = vadd.f32 1.0, %v719_v52  ;;  %1054 = vrcp.f32 %v679_v63 }
 0x11f   : > { %1056 = vrcp.f32 %v678_v0 }
 0x120   : > { %1058 = vrcp.f32 %v680_v1 }
 0x125   : > { %v1049_v53 = vpop.eup %1048 }
 0x126   : > { %v738_v56 = vmul.f32 %v1049_v53, %v732_v51  ;;  %v1051_v57 = vpop.eup %1050 }
 0x127   : > { %v737_v60 = vmul.f32 %v1051_v57, %v731_v55  ;;  %v1053_v10 = vpop.eup %1052 }
 0x128   : > { %v740_v58 = vadd.f32 %v738_v56, %v730_v54  ;;  %v1055_v17 = vpop.eup %1054 }
 0x129   : > { %v739_v61 = vadd.f32 %v737_v60, %v729_v59  ;;  %v1057_v18 = vpop.eup %1056 }
 0x12a   : > { %743 = vst.msk [vmem:[#allocation2 + $0x8] sm:$0xff] %vm741_vm8, %v740_v58  ;;  %v1059_v25 = vpop.eup %1058 }
 0x12b   : > { %742 = vst.msk [vmem:[#allocation2] sm:$0xff] %vm741_vm8, %v739_v61 }
 0x131   : > { %v751_v36 = vld [vmem:[#allocation2 + $0x8] sm:$0xff] (!%p904_p11) }
 0x132   : > { %v750_v34 = vld [vmem:[#allocation2] sm:$0xff] (!%p904_p11) }
 0x133   : > { %754 = vperm.xlu0 (!%p904_p11), %1060, %v750_v34  }
 0x137   : > { %759 = vperm.xlu0 (!%p904_p11), %1060, %v751_v36  }
 0x16f   : > { %v418_v2 = vpop.f32.mrb[0].mxu0  ;;  %v426_v3 = vpop.f32.mrb[0].mxu1 }
 0x170   : > { %v433_v4 = vmul.f32 2.0, %v418_v2  ;;  %v435_v5 = vmul.f32 2.0, %v426_v3  ;;  %v420_v6 = vpop.f32.mrb[1].mxu0  ;;  %v428_v7 = vpop.f32.mrb[1].mxu1 }
 0x171   : > { %v421_v8 = vpop.f32.mrb[2].mxu0  ;;  %v429_v9 = vpop.f32.mrb[2].mxu1 }
 0x172   : > { %v529_v11 = vadd.f32 1.0, %v433_v4  ;;  %v531_v12 = vadd.f32 1.0, %v435_v5  ;;  %v434_v13 = vmul.f32 2.0, %v421_v8  ;;  %v436_v14 = vmul.f32 2.0, %v429_v9  ;;  %v423_v15 = vpop.f32.mrb[3].mxu0  ;;  %v431_v16 = vpop.f32.mrb[3].mxu1 }
 0x174   : > { %v685_v19 = vmul.f32 %v1053_v10, %v529_v11  ;;  %v687_v20 = vmul.f32 %v1055_v17, %v531_v12  ;;  %v530_v21 = vadd.f32 1.0, %v434_v13  ;;  %v532_v24 = vadd.f32 1.0, %v436_v14 }
 0x176   : > { %v691_v27 = vadd.f32 %v687_v20, %v685_v19  ;;  %v686_v28 = vmul.f32 %v1057_v18, %v530_v21  ;;  %v688_v29 = vmul.f32 %v1059_v25, %v532_v24  ;;  %747 = sbr.rel (%p904_p11) target bundleno = 444 (0x1bc), region = 44 }
 0x178   : > { %v693_v31 = vadd.f32 %v691_v27, %v689_v26  ;;  %v692_v32 = vadd.f32 %v688_v29, %v686_v28 }
 0x17a   : > { %695 = vst [vmem:[#allocation8] sm:$0xff] %v693_v31  ;;  %v694_v33 = vadd.f32 %v692_v32, %v690_v30 }
 0x17c   : > { %696 = vst [vmem:[#allocation8 + $0x8] sm:$0xff] %v694_v33 }
 0x181   : > { %v748_v37 = vld [vmem:[#allocation8] sm:$0xff] }
 0x183   : > { %v749_v39 = vld [vmem:[#allocation8 + $0x8] sm:$0xff] }
 0x1b2   : > { %v755_v22 = vpop.permute.xlu0 %754 }
 0x1b3   : > { %v762_v38 = vadd.f32 %v755_v22, %v748_v37 }
 0x1b5   : > { %v764_v40 = vmul.f32 -0.5, %v762_v38 }
 0x1b6   : > { %v760_v41 = vpop.permute.xlu0 %759 }
 0x1b7   : > { %766 = vst [vmem:[#allocation8] sm:$0xff] %v764_v40  ;;  %v763_v42 = vadd.f32 %v760_v41, %v749_v39 }
 0x1b9   : > { %v765_v43 = vmul.f32 -0.5, %v763_v42 }
 0x1bb   : > { %767 = vst [vmem:[#allocation8 + $0x8] sm:$0xff] %v765_v43 }
 0x1bc PF: > { %p1513_p4 = scmp.eq.s32.totalorder %s867_s15, 1  ;;  %s1213_s20 = smov [#allocation8]  }
 0x1bd   : > { %s777_s24 = sshll.u32 %s1213_s20, 4  ;;  %s778_s24 = int_to_ptr.vmem [resolvable:$true] %s777_s24 }
 0x1be   : > { %s1121_s25 = scalar_lea.vmem %s778_s24, 256  ;;  %p1128_p13 = scmp.lt.s32.totalorder %s778_s24, %s778_s24 }
 0x1bf   : > { %p1122_p8 = scmp.ne.s32.totalorder %s778_s24, %s1121_s25  ;;  %p1129_p3 = scmp.lt.s32.totalorder %s1121_s25, %s1121_s25 }
 0x1c1   : > { %p1123_p1 = pnand %p1122_p8, %p1513_p4  ;;  %p1130_p5 = por %p1129_p3, %p1128_p13 }
 0x1c3   : > { %p1124_p2 = pneg %p1123_p1 }
 0x1c5   : > { %p1131_p6 = pnand %p1130_p5, %p1124_p2 }
 0x1c7   : > { %1134 = shalt.err (!%p1131_p6)
}
 0x1c8   : > { %s1135_s15 = scalar_lea.hbm %s1559_s2, 256 }
 0x1c9   : > { %p1136_p10 = scmp.ne.s32.totalorder %s1559_s2, %s1135_s15  ;;  %p1141_p7 = scmp.lt.u32.totalorder %s1135_s15, %s1559_s2 }
 0x1cb   : > { %p1137_p12 = pnand %p1136_p10, %p1513_p4 }
 0x1cd   : > { %p1138_p0 = pneg %p1137_p12 }
 0x1cf   : > { %p1143_p9 = pnand %p1141_p7, %p1138_p0 }
 0x1d1   : > { %1146 = shalt.err (!%p1143_p9)
}
 0x1d2   : > { %s1214_s26 = smov 128   ;;  %s1215_s4 = smov 8  }
 0x1d3   : > { %932 = dma.vmem_to_hbm [thread:$0]  (%p1513_p4), %s778_s24, 256, %s1559_s2, [#allocation5], %s1214_s26, %s1214_s26, %s1215_s4  }
 0x1d4   : > { %1180 = dma.done.wait (%p1513_p4), [#allocation5], 256  }
 0x1d5   : > { %1182 = vsyncadd (%p1513_p4), [#allocation5], 4294967040 }
 0x1d6 PF: > { %s19_s14 = sadd.s32 1, %s1205_s14   ;;  %s1567_s9 = smov %s1189_s10 }
 0x1d7   : > { %p16_p11 = scmp.ge.s32.totalorder %s19_s14, 4   ;;  %s1568_s10 = smov %s1193_s11 }
 0x1d8   : > { %s1569_s11 = smov %s1282_s21  ;;  %s1570_s12 = smov %s1201_s13 }
 0x1d9   : > { %s1571_s13 = smov %s1573_s16  ;;  %18 = sbr.rel (!%p16_p11) target bundleno = 7 (0x7), region = 87 }
 0x1e0   :  { %793 = vsyncpa [#allocation4], 1 }
 0x1e1   :  { %795 = vsyncpa [#allocation4 + $0x1], 1 }
 0x1e2   :  { %796 = vsyncpa [#allocation7], 1 }
 0x1e3   :  { %798 = vsyncpa [#allocation7 + $0x1], 1 }
 0x1e4   :  { %799 = vsyncpa [#allocation5], 1 }
 0x1e5   :  { %801 = vsyncpa [#allocation5 + $0x1], 1 }

</bundles_post_ra>
